<compile_context>
chip_gen: v6e
topology: v6e:2x2x1
jax: 0.10.0
libtpu: 0.0.40
codegen_flags: <defaults>
</compile_context>

<pallas_src>
import functools

import jax
import jax.numpy as jnp
from jax.experimental import pallas as pl
from jax.experimental.pallas import tpu as pltpu

_MIB = 1024 * 1024


# ---------------------------------------------------------------------------
# Kernels
# ---------------------------------------------------------------------------
def _patch_embed_kernel(x_ref, w_ref, p_ref, o_ref):
    # x_ref: (TM, K) flattened patches; w_ref: (K, E); p_ref: (8, E) params
    # (row 0 = conv bias).
    acc = jnp.dot(x_ref[...], w_ref[...], preferred_element_type=jnp.float32)
    acc = acc + p_ref[0:1, :].astype(jnp.float32)
    o_ref[...] = acc.astype(o_ref.dtype)


def _patch_embed_ln_kernel(x_ref, w_ref, p_ref, o_ref, *, eps, inv_e):
    # Matmul + bias in f32 on the MXU.
    acc = jnp.dot(x_ref[...], w_ref[...], preferred_element_type=jnp.float32)
    acc = acc + p_ref[0:1, :].astype(jnp.float32)

    # Two-pass LayerNorm statistics over the (true, unpadded) embedding dim.
    mean = jnp.sum(acc, axis=-1, keepdims=True) * inv_e
    centered = acc - mean
    var = jnp.sum(centered * centered, axis=-1, keepdims=True) * inv_e
    normed = centered * jax.lax.rsqrt(var + eps)
    out = (normed * p_ref[1:2, :].astype(jnp.float32)
           + p_ref[2:3, :].astype(jnp.float32))
    o_ref[...] = out.astype(o_ref.dtype)


# ---------------------------------------------------------------------------
# Tiling helpers
# ---------------------------------------------------------------------------
def _round_up(x, m):
    return ((x + m - 1) // m) * m


def _vmem_capacity_bytes():
    try:
        cap = int(pltpu.get_tpu_info().vmem_capacity_bytes)
        if cap > 0:
            return cap
    except Exception:
        pass
    return 64 * _MIB          # conservative default: v7x per-TensorCore VMEM


def _choose_tm(M, K, E, in_bytes, out_bytes, vmem_limit):
    """Pick an M-tile so that the double-buffered activation/output tiles plus
    the (also double-buffered) resident weight and parameter blocks fit well
    inside `vmem_limit`, while keeping >= ~4 grid steps for megacore sharding
    and DMA/compute overlap when M is large."""
    if M <= 512:
        return M                                     # full-dim block, always legal
    # Bytes that do not scale with TM: weight + packed params (x2 buffers each).
    fixed = 2 * K * E * in_bytes + 2 * 8 * E * 4
    budget = int(vmem_limit * 0.7) - fixed
    # Double-buffered activation tile + output tile, per row.
    per_row = 2 * (K * in_bytes + E * out_bytes)
    tm = max(budget // max(per_row, 1), 256)
    tm = (tm // 256) * 256                            # MXU / sublane friendly
    # Keep >= ~4 grid steps: both v7x TensorCores get work and the pipeline
    # has iterations to overlap DMA with compute.
    tm = min(tm, _round_up(pl.cdiv(M, 4), 256))
    return max(256, min(tm, M))


# ---------------------------------------------------------------------------
# Wrapper
# ---------------------------------------------------------------------------
def patch_embed_2d(x, conv_w, conv_b, patch_size, ln_gamma=None, ln_beta=None,
                   eps=1e-5, compute_dtype=None):
    """Forward pass of PatchEmbed2D.

    x:       (B, C, H, W)            NCHW, like PyTorch
    conv_w:  (E, C, p, p)            Conv2d weight
    conv_b:  (E,)                    Conv2d bias
    returns: (B, H//p, W//p, E)      == proj(x).permute(0, 2, 3, 1) [+ LayerNorm]
    """
    if isinstance(patch_size, (tuple, list)):
        assert patch_size[0] == patch_size[1]
        patch_size = patch_size[0]
    B, C, H, W = x.shape
    p = patch_size
    assert H % p == 0 and W % p == 0
    Hp, Wp = H // p, W // p
    E = conv_w.shape[0]
    K = C * p * p
    M = B * Hp * Wp

    # Host-side patchify glue: extract non-overlapping patches, flatten in
    # (C, kh, kw) order to match Conv2d's weight layout (E, C, kh, kw).
    # TODO(synk): fold this rearrange into the kernel (raw NCHW band BlockSpec
    # + in-VMEM relayout) to drop the extra HBM pass it costs.
    xp = (x.reshape(B, C, Hp, p, Wp, p)
            .transpose(0, 2, 4, 1, 3, 5)              # (B, Hp, Wp, C, p, p)
            .reshape(M, K))
    wm = conv_w.reshape(E, K).T                        # (K, E)
    if compute_dtype is not None:
        # Halves HBM traffic for x / W (cast fuses into the transpose under
        # jit); in-kernel accumulation stays f32.
        xp = xp.astype(compute_dtype)
        wm = wm.astype(compute_dtype)

    # Bias / gamma / beta packed into one resident (8, E) parameter block.
    params = jnp.zeros((8, E), jnp.float32).at[0, :].set(conv_b.astype(jnp.float32))
    use_ln = ln_gamma is not None
    if use_ln:
        params = params.at[1, :].set(ln_gamma.astype(jnp.float32))
        params = params.at[2, :].set(ln_beta.astype(jnp.float32))

    out_dtype = x.dtype
    in_bytes = xp.dtype.itemsize
    out_bytes = x.dtype.itemsize

    vmem_cap = _vmem_capacity_bytes()
    vmem_limit = max(min(vmem_cap - 16 * _MIB, 112 * _MIB), 32 * _MIB)
    TM = _choose_tm(M, K, E, in_bytes, out_bytes, vmem_limit)
    grid = (pl.cdiv(M, TM),)

    x_spec = pl.BlockSpec((TM, K), lambda i: (i, 0))
    w_spec = pl.BlockSpec((K, E), lambda i: (0, 0))    # resident weight
    p_spec = pl.BlockSpec((8, E), lambda i: (0, 0))    # resident bias/gamma/beta
    o_spec = pl.BlockSpec((TM, E), lambda i: (i, 0))

    cparams = pltpu.CompilerParams(
        dimension_semantics=("parallel",),             # megacore sharding on v7x
        vmem_limit_bytes=int(vmem_limit),
    )
    cost = pl.CostEstimate(
        flops=2 * M * K * E,
        transcendentals=M if use_ln else 0,
        bytes_accessed=(M * K * in_bytes + K * E * in_bytes
                        + 8 * E * 4 + M * E * out_bytes),
    )

    if use_ln:
        kernel = functools.partial(_patch_embed_ln_kernel, eps=eps, inv_e=1.0 / E)
    else:
        kernel = _patch_embed_kernel

    out = pl.pallas_call(
        kernel,
        out_shape=jax.ShapeDtypeStruct((M, E), out_dtype),
        grid=grid,
        in_specs=[x_spec, w_spec, p_spec],
        out_specs=o_spec,
        compiler_params=cparams,
        cost_estimate=cost,
    )(xp, wm, params)

    return out.reshape(B, Hp, Wp, E)


# ---------------------------------------------------------------------------
# Pure-JAX reference
# ---------------------------------------------------------------------------
def _reference(x, conv_w, conv_b, patch_size, ln_gamma=None, ln_beta=None, eps=1e-5):
    B, C, H, W = x.shape
    p = patch_size
    Hp, Wp = H // p, W // p
    E = conv_w.shape[0]
    xp = (x.reshape(B, C, Hp, p, Wp, p)
            .transpose(0, 2, 4, 1, 3, 5)
            .reshape(B, Hp, Wp, C * p * p))
    y = jnp.einsum("bhwk,ek->bhwe", xp, conv_w.reshape(E, -1),
                   precision=jax.lax.Precision.HIGHEST) + conv_b
    if ln_gamma is not None:
        mu = jnp.mean(y, -1, keepdims=True)
        var = jnp.mean((y - mu) ** 2, -1, keepdims=True)
        y = (y - mu) / jnp.sqrt(var + eps) * ln_gamma + ln_beta
    return y


if __name__ == "__main__":
    key = jax.random.PRNGKey(0)
    k_x, k_w, k_b = jax.random.split(key, 3)

    # Small shapes consistent with the module: B=2, in_chans=4, H=W=16,
    # patch_size=4, embed_dim=32.
    B, C, H, W = 2, 4, 16, 16
    patch_size = 4
    embed_dim = 32

    x = jax.random.normal(k_x, (B, C, H, W), dtype=jnp.float32)
    conv_w = jax.random.normal(k_w, (embed_dim, C, patch_size, patch_size),
                               dtype=jnp.float32) * 0.05
    conv_b = jax.random.normal(k_b, (embed_dim,), dtype=jnp.float32) * 0.05

    # Default constructor: norm_layer=None -> conv + permute only.
    out = jax.block_until_ready(patch_embed_2d(x, conv_w, conv_b, patch_size))
    ref = _reference(x, conv_w, conv_b, patch_size)
    assert out.shape == (B, H // patch_size, W // patch_size, embed_dim)
    assert jnp.allclose(out, ref, atol=1e-5, rtol=1e-5)

    # norm_layer=nn.LayerNorm path (LayerNorm fused into the kernel).
    gamma = jax.random.normal(jax.random.PRNGKey(1), (embed_dim,), jnp.float32) * 0.1 + 1.0
    beta = jax.random.normal(jax.random.PRNGKey(2), (embed_dim,), jnp.float32) * 0.1
    out_ln = jax.block_until_ready(
        patch_embed_2d(x, conv_w, conv_b, patch_size, gamma, beta))
    ref_ln = _reference(x, conv_w, conv_b, patch_size, gamma, beta)
    assert jnp.allclose(out_ln, ref_ln, atol=1e-4, rtol=1e-4)

    # Optional reduced-precision fast path: bf16 activation/weight, f32 accum.
    out_bf16 = jax.block_until_ready(
        patch_embed_2d(x, conv_w, conv_b, patch_size, compute_dtype=jnp.bfloat16))
    assert jnp.allclose(out_bf16, ref, atol=5e-2, rtol=5e-2)

    print("KERNEL_OK")
</pallas_src>

<mosaic_0001>
module attributes {stable_mosaic.version = 11 : i64} {
  func.func @_patch_embed_kernel(%arg0: i32, %arg1: memref<32x64xf32, #tpu.memory_space<vmem>>, %arg2: memref<64x32xf32, #tpu.memory_space<vmem>>, %arg3: memref<8x32xf32, #tpu.memory_space<vmem>>, %arg4: memref<32x32xf32, #tpu.memory_space<vmem>>) attributes {dimension_semantics = [#tpu.dimension_semantics<parallel>], iteration_bounds = array<i64: 1>, scalar_prefetch = 0 : i64, scratch_operands = 0 : i64, tpu.core_type = #tpu.core_type<tc>, window_params = [{transform_indices = @transform_0, window_bounds = array<i64: 32, 64>}, {pipeline_mode = #tpu.pipeline_mode<synchronous>, transform_indices = @transform_1, window_bounds = array<i64: 64, 32>}, {pipeline_mode = #tpu.pipeline_mode<synchronous>, transform_indices = @transform_2, window_bounds = array<i64: 8, 32>}, {transform_indices = @transform_3, window_bounds = array<i64: 32, 32>}]} {
    %c0 = arith.constant 0 : index
    %c0_0 = arith.constant 0 : index
    %0 = vector.load %arg1[%c0, %c0_0] : memref<32x64xf32, #tpu.memory_space<vmem>>, vector<32x64xf32>
    %c0_1 = arith.constant 0 : index
    %c0_2 = arith.constant 0 : index
    %1 = vector.load %arg2[%c0_1, %c0_2] : memref<64x32xf32, #tpu.memory_space<vmem>>, vector<64x32xf32>
    %cst = arith.constant dense<0.000000e+00> : vector<32x32xf32>
    %2 = tpu.matmul %0, %1, %cst {dimension_numbers = #tpu.dot_dimension_numbers<[1], [0], [0], [1], [0, 0, 1, 1], [], []>} : vector<32x64xf32>, vector<64x32xf32>, vector<32x32xf32> -> vector<32x32xf32>
    %c0_3 = arith.constant 0 : index
    %c0_4 = arith.constant 0 : index
    %3 = vector.load %arg3[%c0_3, %c0_4] : memref<8x32xf32, #tpu.memory_space<vmem>>, vector<1x32xf32>
    %4 = vector.broadcast %3 : vector<1x32xf32> to vector<32x32xf32>
    %5 = arith.addf %2, %4 : vector<32x32xf32>
    %c0_5 = arith.constant 0 : index
    %c0_6 = arith.constant 0 : index
    %6 = vector.load %arg4[%c0_5, %c0_6] : memref<32x32xf32, #tpu.memory_space<vmem>>, vector<32x32xf32>
    tpu.vector_store %arg4[%c0_5, %c0_6], %5 {strides = array<i32>} : memref<32x32xf32, #tpu.memory_space<vmem>>, vector<32x32xf32>,
    return
  }
  func.func @transform_0(%arg0: i32) -> (i32, i32) {
    %c0_i32 = arith.constant 0 : i32
    %c0_i32_0 = arith.constant 0 : i32
    return %arg0, %c0_i32 : i32, i32
  }
  func.func @transform_1(%arg0: i32) -> (i32, i32) {
    %c0_i32 = arith.constant 0 : i32
    %c0_i32_0 = arith.constant 0 : i32
    %c0_i32_1 = arith.constant 0 : i32
    return %c0_i32, %c0_i32_0 : i32, i32
  }
  func.func @transform_2(%arg0: i32) -> (i32, i32) {
    %c0_i32 = arith.constant 0 : i32
    %c0_i32_0 = arith.constant 0 : i32
    %c0_i32_1 = arith.constant 0 : i32
    return %c0_i32, %c0_i32_0 : i32, i32
  }
  func.func @transform_3(%arg0: i32) -> (i32, i32) {
    %c0_i32 = arith.constant 0 : i32
    %c0_i32_0 = arith.constant 0 : i32
    return %arg0, %c0_i32 : i32, i32
  }
}

</mosaic_0001>

<bundles_post_ra>
// kernel: tpu_custom_call.1
= control target key start
LH: loop header
LB: loop body
LE: loop exit
PB: predicated region body
PF: predicated region fallthrough
CT: control target
= control target key end

     0   :  { %s296_s0 = inlined_call_operand.vmem [shape: f32[32,64], index: 0, kind: input, shape index: {}]   ;;  %s297_s1 = inlined_call_operand.vmem [shape: f32[64,32], index: 1, kind: input, shape index: {}]   ;;  %s298_s2 = inlined_call_operand.vmem [shape: f32[8,32], index: 2, kind: input, shape index: {}]   ;;  %s299_s3 = inlined_call_operand.hbm [shape: f32[32,32], index: 3, kind: output, shape index: {}]  }
   0x1   :  { %v26_v0 = vld [vmem:[%s297_s1 + $0x38] sm:$0xff]  ;;  %v25_v1 = vld [vmem:[%s297_s1 + $0x30] sm:$0xff]  ;;  %v24_v2 = vld [vmem:[%s297_s1 + $0x28] sm:$0xff] }
   0x2   :  { %168 = vmatprep.subr.mxu0 %v26_v0  ;;  %190 = vmatprep.subr.mxu1 %v26_v0  ;;  %v23_v3 = vld [vmem:[%s297_s1 + $0x20] sm:$0xff] }
   0x3   :  { %169 = vmatpush3.msra.mxu0 %v26_v0  ;;  %198 = vmatpush3.msra.mxu1 %v26_v0 }
   0x4   :  { %170 = vmatprep.subr.mxu0 %v25_v1  ;;  %191 = vmatprep.subr.mxu1 %v25_v1 }
   0x5   :  { %171 = vmatpush3.msra.mxu0 %v25_v1  ;;  %199 = vmatpush3.msra.mxu1 %v25_v1 }
   0x6   :  { %8 = vsyncpa [#allocation3], 0  ;;  %172 = vmatprep.subr.mxu0 %v24_v2  ;;  %192 = vmatprep.subr.mxu1 %v24_v2  ;;  %v22_v4 = vld [vmem:[%s297_s1 + $0x18] sm:$0xff]  ;;  %v21_v5 = vld [vmem:[%s297_s1 + $0x10] sm:$0xff]  ;;  %vm32_vm0 = vcmask 523264   ;;  %s231_s10 = smov [#allocation2]  }
   0x7   :  { %173 = vmatpush3.msra.mxu0 %v24_v2  ;;  %200 = vmatpush3.msra.mxu1 %v24_v2  ;;  %v20_v6 = vld [vmem:[%s297_s1 + $0x8] sm:$0xff]  ;;  %v19_v7 = vld [vmem:[%s297_s1] sm:$0xff]  ;;  %v17_v9 = vld [vmem:[%s296_s0 + $0x10] sm:$0xff]  ;;  %s140_s11 = sshll.u32 %s231_s10, 4  ;;  %vm130_vm1 = vcmask 261120   ;;  %s141_s11 = int_to_ptr.vmem [resolvable:$true] %s140_s11 }
   0x8   :  { %174 = vmatprep.subr.mxu0 %v23_v3  ;;  %193 = vmatprep.subr.mxu1 %v23_v3  ;;  %v15_v8 = vld [vmem:[%s296_s0] sm:$0xff]  ;;  %v16_v10 = vld [vmem:[%s296_s0 + $0x8] sm:$0xff]  ;;  %v18_v11 = vld [vmem:[%s296_s0 + $0x18] sm:$0xff]  ;;  %s209_s0 = scalar_lea.vmem %s141_s11, 512  ;;  %p214_p1 = scmp.lt.s32.totalorder %s141_s11, %s141_s11 }
   0x9   :  { %175 = vmatpush3.msra.mxu0 %v23_v3  ;;  %201 = vmatpush3.msra.mxu1 %v23_v3  ;;  %v151_v12 = vld [vmem:[%s298_s2] ss:$0 sm:$0xff]  ;;  %p210_p0 = scmp.ne.s32.totalorder %s141_s11, %s209_s0  ;;  %p215_p2 = scmp.lt.s32.totalorder %s209_s0, %s209_s0 }
   0xa   :  { %176 = vmatprep.subr.mxu0 %v22_v4  ;;  %194 = vmatprep.subr.mxu1 %v22_v4 }
   0xb   :  { %177 = vmatpush3.msra.mxu0 %v22_v4  ;;  %202 = vmatpush3.msra.mxu1 %v22_v4  ;;  %p216_p3 = por %p215_p2, %p214_p1 }
   0xc   :  { %178 = vmatprep.subr.mxu0 %v21_v5  ;;  %195 = vmatprep.subr.mxu1 %v21_v5 }
   0xd   :  { %179 = vmatpush3.msra.mxu0 %v21_v5  ;;  %203 = vmatpush3.msra.mxu1 %v21_v5  ;;  %p217_p4 = pnand %p216_p3, %p210_p0 }
   0xe   :  { %180 = vmatprep.subr.mxu0 %v20_v6  ;;  %196 = vmatprep.subr.mxu1 %v20_v6 }
   0xf   :  { %181 = vmatpush3.msra.mxu0 %v20_v6  ;;  %204 = vmatpush3.msra.mxu1 %v20_v6 }
  0x10   :  { %182 = vmatprep.subr.mxu0 %v19_v7  ;;  %197 = vmatprep.subr.mxu1 %v19_v7 }
  0x11   :  { %183 = vmatpush3.msra.mxu0 %v19_v7  ;;  %205 = vmatpush3.msra.mxu1 %v19_v7 }
  0x12   :  { %184 = vmatprep.mubr.msk.f32.mxu0 %vm32_vm0, %v15_v8  ;;  %187 = vmatprep.mubr.msk.f32.mxu1 %vm32_vm0, %v17_v9 }
  0x13   :  { %185 = vmatmul.mubr.msk.f32.vlgmr.msra.gmra.mxu0 %vm32_vm0, %v16_v10  ;;  %188 = vmatmul.mubr.msk.f32.vlgmr.msra.gmra.mxu1 %vm32_vm0, %v18_v11 }
  0xd3   :  { %v186_v13 = vpop.f32.mrf.mxu0  ;;  %v189_v14 = vpop.f32.mrf.mxu1 }
  0xd4   :  { %v117_v15 = vadd.f32 %v186_v13, %v151_v12  ;;  %v127_v16 = vadd.f32 %v189_v14, %v151_v12 }
  0xd5   :  { %v111_v17 = vpop.f32.mrf.mxu0  ;;  %v121_v18 = vpop.f32.mrf.mxu1 }
  0xd6   :  { %132 = vst.msk [vmem:[#allocation2 + $0x8] sm:$0xff] %vm130_vm1, %v117_v15  ;;  %134 = vst.msk [vmem:[#allocation2 + $0x18] sm:$0xff] %vm130_vm1, %v127_v16  ;;  %v112_v19 = vadd.f32 %v151_v12, %v111_v17  ;;  %v122_v20 = vadd.f32 %v151_v12, %v121_v18 }
  0xd8   :  { %131 = vst.msk [vmem:[#allocation2] sm:$0xff] %vm130_vm1, %v112_v19  ;;  %133 = vst.msk [vmem:[#allocation2 + $0x10] sm:$0xff] %vm130_vm1, %v122_v20 }
  0xd9   :  { %220 = shalt.err (!%p217_p4)
}
  0xda   :  { %s232_s2 = smov 128   ;;  %s233_s12 = smov 8  }
  0xdb   :  { %146 = dma.vmem_to_hbm [thread:$0]  %s141_s11, 512, %s299_s3, [#allocation3], %s232_s2, %s232_s2, %s233_s12  }
  0xdc   :  { %229 = dma.done.wait [#allocation3], 512  }
  0xdd   :  { %230 = vsyncadd [#allocation3], 4294966784 }
  0xde   :  { %150 = vsyncpa [#allocation3], 1 }

</bundles_post_ra>
